<compile_context>
chip_gen: v6e
topology: v6e:2x2x1
jax: 0.10.0
libtpu: 0.0.40
codegen_flags: <defaults>
</compile_context>

<pallas_src>
import functools

import jax
import jax.numpy as jnp
from jax.experimental import pallas as pl
from jax.experimental.pallas import tpu as pltpu


def _copy_kernel(x_ref, o_ref):
    # Straight elementwise copy of the current VMEM block.
    o_ref[...] = x_ref[...]


# Per-block byte budget. Pallas double-buffers input and output, so the VMEM
# footprint is ~4x this value (~24 MiB) -- comfortably inside v7x's 64 MiB
# physical VMEM and far inside v5e/v6e's 128 MiB.
_BLOCK_BYTE_BUDGET = 6 * 1024 * 1024
_VMEM_LIMIT_BYTES = 48 * 1024 * 1024


def _pallas_copy_2d(x2d: jax.Array) -> jax.Array:
    """Tiled HBM->VMEM->HBM copy of a 2-D array, sized for the HBM roofline."""
    n_rows, n_cols = x2d.shape
    itemsize = jnp.dtype(x2d.dtype).itemsize

    # Rows per block from the byte budget, rounded down to a multiple of 8
    # (sublane granularity). If the whole array fits in one budget-sized block,
    # use the full extent (always a legal block shape).
    budget_rows = max(8, (_BLOCK_BYTE_BUDGET // (n_cols * itemsize)) // 8 * 8)
    tile_rows = n_rows if n_rows <= budget_rows else budget_rows

    grid = (pl.cdiv(n_rows, tile_rows),)

    return pl.pallas_call(
        _copy_kernel,
        out_shape=jax.ShapeDtypeStruct((n_rows, n_cols), x2d.dtype),
        grid_spec=pltpu.PrefetchScalarGridSpec(
            num_scalar_prefetch=0,
            grid=grid,
            in_specs=[pl.BlockSpec((tile_rows, n_cols), lambda i: (i, 0))],
            out_specs=pl.BlockSpec((tile_rows, n_cols), lambda i: (i, 0)),
        ),
        # Output has identical shape/dtype to the input: let XLA reuse the
        # input HBM buffer instead of allocating a second N*emb_dim array.
        input_output_aliases={0: 0},
        compiler_params=pltpu.CompilerParams(
            dimension_semantics=("parallel",),
            vmem_limit_bytes=_VMEM_LIMIT_BYTES,
        ),
        cost_estimate=pl.CostEstimate(
            flops=0,
            transcendentals=0,
            bytes_accessed=2 * n_rows * n_cols * itemsize,
        ),
    )(x2d)


@functools.partial(jax.jit, static_argnums=1)
def identity_transform(value: jax.Array, emb_dim: int) -> jax.Array:
    """Equivalent of IdentityTransform(emb_dim).forward(value)."""
    total = value.size
    n_rows = total // emb_dim

    # Lane-dense slab for the copy: pick the widest lane width (multiple of
    # 128) that divides the element count; the reshapes to/from the slab are
    # metadata-only under XLA, so this is free layout plumbing that turns
    # masked 32-wide partial stores into full-width stores.
    lane_width = None
    for cand in (1024, 512, 256, 128):
        if total % cand == 0:
            lane_width = cand
            break

    if lane_width is not None:
        slab = value.reshape(total // lane_width, lane_width)
        out = _pallas_copy_2d(slab)
        return out.reshape(n_rows, emb_dim)

    # Fallback (element count not a multiple of 128): copy directly in the
    # logical (n_rows, emb_dim) layout with emb_dim as the full last extent.
    x2d = value.reshape(n_rows, emb_dim)
    return _pallas_copy_2d(x2d)


if __name__ == "__main__":
    key = jax.random.PRNGKey(0)
    emb_dim = 32
    # Input shaped like a stack of node embeddings: (batch=2, nodes=4, emb_dim)
    value = jax.random.normal(key, (2, 4, emb_dim), dtype=jnp.float32)

    out = identity_transform(value, emb_dim)
    out = jax.block_until_ready(out)

    # Reference check: pure reshape (same row-major flattening as torch .view).
    ref = value.reshape(-1, emb_dim)
    assert out.shape == (8, emb_dim), out.shape
    assert out.dtype == value.dtype
    assert jnp.array_equal(out, ref), "mismatch vs reference reshape"

    print("KERNEL_OK")
</pallas_src>

<mosaic_0001>
module attributes {stable_mosaic.version = 11 : i64} {
  func.func @_copy_kernel(%arg0: i32, %arg1: memref<1x256xf32, #tpu.memory_space<vmem>>, %arg2: memref<1x256xf32, #tpu.memory_space<vmem>>) attributes {dimension_semantics = [#tpu.dimension_semantics<parallel>], iteration_bounds = array<i64: 1>, scalar_prefetch = 0 : i64, scratch_operands = 0 : i64, tpu.core_type = #tpu.core_type<tc>, window_params = [{transform_indices = @transform_0, window_bounds = array<i64: 1, 256>}, {transform_indices = @transform_1, window_bounds = array<i64: 1, 256>}]} {
    %c0 = arith.constant 0 : index
    %c0_0 = arith.constant 0 : index
    %0 = vector.load %arg1[%c0, %c0_0] : memref<1x256xf32, #tpu.memory_space<vmem>>, vector<1x256xf32>
    %c0_1 = arith.constant 0 : index
    %c0_2 = arith.constant 0 : index
    %1 = vector.load %arg2[%c0_1, %c0_2] : memref<1x256xf32, #tpu.memory_space<vmem>>, vector<1x256xf32>
    tpu.vector_store %arg2[%c0_1, %c0_2], %0 {strides = array<i32>} : memref<1x256xf32, #tpu.memory_space<vmem>>, vector<1x256xf32>,
    return
  }
  func.func @transform_0(%arg0: i32) -> (i32, i32) {
    %c0_i32 = arith.constant 0 : i32
    %c0_i32_0 = arith.constant 0 : i32
    return %arg0, %c0_i32 : i32, i32
  }
  func.func @transform_1(%arg0: i32) -> (i32, i32) {
    %c0_i32 = arith.constant 0 : i32
    %c0_i32_0 = arith.constant 0 : i32
    return %arg0, %c0_i32 : i32, i32
  }
}

</mosaic_0001>

<bundles_post_ra>
// kernel: identity_transform.1
= control target key start
LH: loop header
LB: loop body
LE: loop exit
PB: predicated region body
PF: predicated region fallthrough
CT: control target
= control target key end

     0   :  { %v9_v0 = vlaneseq  ;;  %s34_s0 = inlined_call_operand.vmem [shape: f32[1,256], index: 0, kind: input, shape index: {}, may-alias: {0,1}]   ;;  %s35_s1 = inlined_call_operand.vmem [shape: f32[1,256], index: 1, kind: output, shape index: {}, may-alias: {0,1}]  }
   0x1   :  { %v8_v1 = vld [vmem:[%s34_s0] sm:$0x3] }
   0x2   :  { %vm11_vm0 = vcmp.lt.s32.totalorder %v9_v0, 256 }
   0x3   :  { %13 = vst.msk [vmem:[%s35_s1] sm:$0x3] %vm11_vm0, %v8_v1 }

</bundles_post_ra>
